<compile_context>
chip_gen: v7x
topology: tpu7x:2x2x1
jax: 0.10.0
libtpu: 0.0.40
codegen_flags: <defaults>
</compile_context>

<pallas_src>
import functools

import jax
import jax.numpy as jnp
from jax.experimental import pallas as pl
from jax.experimental.pallas import tpu as pltpu


def _wbm_loss_kernel(lambd_ref, x_ref, t_ref, v1_ref, v2_ref, w_ref, b_ref,
                     o_ref, l1_acc, n1_acc, n2_acc, *, inv_count):
    i = pl.program_id(0)

    @pl.when(i == 0)
    def _init():
        l1_acc[...] = jnp.zeros_like(l1_acc)
        n1_acc[...] = jnp.zeros_like(n1_acc)
        n2_acc[...] = jnp.zeros_like(n2_acc)

    # model(var1) for this batch tile: linear layer on the MXU, f32 accumulate.
    y = jnp.dot(v1_ref[...], w_ref[...], preferred_element_type=jnp.float32)
    y = y + b_ref[...]                                   # (TB, O) + (1, O)

    # Per-tile elementwise partial accumulation (VPU adds that co-issue with
    # the streaming batch-tile DMAs). No cross-lane reduction here.
    l1_acc[...] += jnp.abs(y - v2_ref[...])              # for l1_loss (mean)

    d1 = x_ref[...] - v1_ref[...]
    n1_acc[...] += d1 * d1                               # for ||input_-var1||_2

    d2 = t_ref[...] - v2_ref[...]
    n2_acc[...] += d2 * d2                               # for ||target-var2||_2

    # Finalize exactly once: three XLU reduces, two EUP sqrt's, scalar combine.
    @pl.when(i == pl.num_programs(0) - 1)
    def _finalize():
        lam = lambd_ref[0, 0]
        l1 = jnp.sum(l1_acc[...]) * inv_count            # mean |y - var2|
        n1 = jnp.sqrt(jnp.sum(n1_acc[...]))
        n2 = jnp.sqrt(jnp.sum(n2_acc[...]))
        o_ref[0, 0] = 0.01 + l1 - lam * n1 - lam * n2


def wbm_loss(lambd, input_, target, var1, var2, w, b, *, tb=64,
             vmem_limit_bytes=32 * 1024 * 1024):
    """Returns the scalar WBM loss as a (1, 1) f32 array."""
    B, H = input_.shape
    _, O = target.shape
    assert var1.shape == (B, H) and var2.shape == (B, O)
    assert w.shape == (H, O) and b.shape == (1, O)
    assert B % tb == 0, "batch must be divisible by the batch tile"
    assert tb % 8 == 0, "batch tile must be a multiple of 8 (sublane)"

    kernel = functools.partial(_wbm_loss_kernel, inv_count=1.0 / float(B * O))

    cost = pl.CostEstimate(
        flops=2 * B * H * O + 6 * B * H + 8 * B * O,
        transcendentals=2,
        bytes_accessed=4 * (2 * B * H + 2 * B * O + H * O + O) + 8,
    )

    return pl.pallas_call(
        kernel,
        out_shape=jax.ShapeDtypeStruct((1, 1), jnp.float32),
        grid_spec=pltpu.PrefetchScalarGridSpec(
            num_scalar_prefetch=0,
            grid=(B // tb,),
            in_specs=[
                pl.BlockSpec((1, 1), lambda i: (0, 0),
                             memory_space=pltpu.SMEM),          # lambd (scalar)
                pl.BlockSpec((tb, H), lambda i: (i, 0)),        # input_  (streamed)
                pl.BlockSpec((tb, O), lambda i: (i, 0)),        # target  (streamed)
                pl.BlockSpec((tb, H), lambda i: (i, 0)),        # var1    (streamed)
                pl.BlockSpec((tb, O), lambda i: (i, 0)),        # var2    (streamed)
                pl.BlockSpec((H, O), lambda i: (0, 0)),         # W (resident)
                pl.BlockSpec((1, O), lambda i: (0, 0)),         # b (resident)
            ],
            out_specs=pl.BlockSpec((1, 1), lambda i: (0, 0),
                                   memory_space=pltpu.SMEM),    # scalar loss
            scratch_shapes=[
                pltpu.VMEM((tb, O), jnp.float32),   # |y - var2| partial sums
                pltpu.VMEM((tb, H), jnp.float32),   # (input_-var1)^2 partials
                pltpu.VMEM((tb, O), jnp.float32),   # (target-var2)^2 partials
            ],
        ),
        compiler_params=pltpu.CompilerParams(
            dimension_semantics=("arbitrary",),     # reduction axis (resident out)
            vmem_limit_bytes=vmem_limit_bytes,
        ),
        cost_estimate=cost,
    )(lambd, input_, target, var1, var2, w, b)


if __name__ == "__main__":
    key = jax.random.PRNGKey(0)
    k_lam, k_x, k_t, k_v1, k_v2, k_w, k_b = jax.random.split(key, 7)

    # Small but lane-dense shapes: feature dims are multiples of 128 so the
    # reduction path fills all vreg lanes; batch tile 64 -> 4-step grid so the
    # batch-tile DMAs double-buffer against compute.
    B, H, O = 256, 128, 128
    TB = 64

    # nn.Parameter(10 + torch.rand(1)) -> deterministic equivalent, as (1,1).
    lambd = (10.0 + jax.random.uniform(k_lam, (1,), dtype=jnp.float32)).reshape(1, 1)

    input_ = jax.random.normal(k_x, (B, H), dtype=jnp.float32)
    var1 = jax.random.normal(k_v1, (B, H), dtype=jnp.float32)
    target = jax.random.normal(k_t, (B, O), dtype=jnp.float32)
    var2 = jax.random.normal(k_v2, (B, O), dtype=jnp.float32)

    # Deterministic "model": linear layer weights.
    w = jax.random.normal(k_w, (H, O), dtype=jnp.float32) * 0.1
    b = jax.random.normal(k_b, (1, O), dtype=jnp.float32) * 0.1

    out = wbm_loss(lambd, input_, target, var1, var2, w, b, tb=TB)
    out = jax.block_until_ready(out)

    # Pure-JAX reference for a sanity check.
    y_ref = var1 @ w + b
    ref = (0.01
           + jnp.mean(jnp.abs(y_ref - var2))
           - lambd[0, 0] * jnp.linalg.norm(input_ - var1)
           - lambd[0, 0] * jnp.linalg.norm(target - var2))
    assert jnp.allclose(out[0, 0], ref, rtol=1e-4, atol=1e-3), (out, ref)

    print("KERNEL_OK")
</pallas_src>

<mosaic_0001>
module attributes {stable_mosaic.version = 11 : i64} {
  func.func @_wbm_loss_kernel(%arg0: i32, %arg1: memref<1x1xf32, #tpu.memory_space<smem>>, %arg2: memref<64x128xf32, #tpu.memory_space<vmem>>, %arg3: memref<64x128xf32, #tpu.memory_space<vmem>>, %arg4: memref<64x128xf32, #tpu.memory_space<vmem>>, %arg5: memref<64x128xf32, #tpu.memory_space<vmem>>, %arg6: memref<128x128xf32, #tpu.memory_space<vmem>>, %arg7: memref<1x128xf32, #tpu.memory_space<vmem>>, %arg8: memref<1x1xf32, #tpu.memory_space<smem>>, %arg9: memref<64x128xf32, #tpu.memory_space<vmem>>, %arg10: memref<64x128xf32, #tpu.memory_space<vmem>>, %arg11: memref<64x128xf32, #tpu.memory_space<vmem>>) attributes {dimension_semantics = [#tpu.dimension_semantics<arbitrary>], iteration_bounds = array<i64: 4>, scalar_prefetch = 0 : i64, scratch_operands = 3 : i64, tpu.core_type = #tpu.core_type<tc>, window_params = [{transform_indices = @transform_0, window_bounds = array<i64: 1, 1>}, {transform_indices = @transform_1, window_bounds = array<i64: 64, 128>}, {transform_indices = @transform_2, window_bounds = array<i64: 64, 128>}, {transform_indices = @transform_3, window_bounds = array<i64: 64, 128>}, {transform_indices = @transform_4, window_bounds = array<i64: 64, 128>}, {pipeline_mode = #tpu.pipeline_mode<synchronous>, transform_indices = @transform_5, window_bounds = array<i64: 128, 128>}, {pipeline_mode = #tpu.pipeline_mode<synchronous>, transform_indices = @transform_6, window_bounds = array<i64: 1, 128>}, {transform_indices = @transform_7, window_bounds = array<i64: 1, 1>}]} {
    %c0_i32 = arith.constant 0 : i32
    %0 = arith.cmpi eq, %arg0, %c0_i32 : i32
    %1 = arith.extui %0 : i1 to i32
    %c0_i32_0 = arith.constant 0 : i32
    %2 = arith.cmpi ne, %1, %c0_i32_0 : i32
    scf.if %2 {
      %cst_29 = arith.constant 0.000000e+00 : f32
      %32 = vector.broadcast %cst_29 : f32 to vector<64x128xf32>
      %c0_30 = arith.constant 0 : index
      %c0_31 = arith.constant 0 : index
      %33 = vector.load %arg9[%c0_30, %c0_31] : memref<64x128xf32, #tpu.memory_space<vmem>>, vector<64x128xf32>
      tpu.vector_store %arg9[%c0_30, %c0_31], %32 {strides = array<i32>} : memref<64x128xf32, #tpu.memory_space<vmem>>, vector<64x128xf32>,
      %cst_32 = arith.constant 0.000000e+00 : f32
      %34 = vector.broadcast %cst_32 : f32 to vector<64x128xf32>
      %c0_33 = arith.constant 0 : index
      %c0_34 = arith.constant 0 : index
      %35 = vector.load %arg10[%c0_33, %c0_34] : memref<64x128xf32, #tpu.memory_space<vmem>>, vector<64x128xf32>
      tpu.vector_store %arg10[%c0_33, %c0_34], %34 {strides = array<i32>} : memref<64x128xf32, #tpu.memory_space<vmem>>, vector<64x128xf32>,
      %cst_35 = arith.constant 0.000000e+00 : f32
      %36 = vector.broadcast %cst_35 : f32 to vector<64x128xf32>
      %c0_36 = arith.constant 0 : index
      %c0_37 = arith.constant 0 : index
      %37 = vector.load %arg11[%c0_36, %c0_37] : memref<64x128xf32, #tpu.memory_space<vmem>>, vector<64x128xf32>
      tpu.vector_store %arg11[%c0_36, %c0_37], %36 {strides = array<i32>} : memref<64x128xf32, #tpu.memory_space<vmem>>, vector<64x128xf32>,
    } else {
    }
    %c0 = arith.constant 0 : index
    %c0_1 = arith.constant 0 : index
    %3 = vector.load %arg4[%c0, %c0_1] : memref<64x128xf32, #tpu.memory_space<vmem>>, vector<64x128xf32>
    %c0_2 = arith.constant 0 : index
    %c0_3 = arith.constant 0 : index
    %4 = vector.load %arg6[%c0_2, %c0_3] : memref<128x128xf32, #tpu.memory_space<vmem>>, vector<128x128xf32>
    %cst = arith.constant dense<0.000000e+00> : vector<64x128xf32>
    %5 = tpu.matmul %3, %4, %cst {dimension_numbers = #tpu.dot_dimension_numbers<[1], [0], [0], [1], [0, 0, 1, 1], [], []>} : vector<64x128xf32>, vector<128x128xf32>, vector<64x128xf32> -> vector<64x128xf32>
    %c0_4 = arith.constant 0 : index
    %c0_5 = arith.constant 0 : index
    %6 = vector.load %arg7[%c0_4, %c0_5] : memref<1x128xf32, #tpu.memory_space<vmem>>, vector<1x128xf32>
    %7 = vector.broadcast %6 : vector<1x128xf32> to vector<64x128xf32>
    %8 = arith.addf %5, %7 : vector<64x128xf32>
    %c0_6 = arith.constant 0 : index
    %c0_7 = arith.constant 0 : index
    %9 = vector.load %arg9[%c0_6, %c0_7] : memref<64x128xf32, #tpu.memory_space<vmem>>, vector<64x128xf32>
    %c0_8 = arith.constant 0 : index
    %c0_9 = arith.constant 0 : index
    %10 = vector.load %arg5[%c0_8, %c0_9] : memref<64x128xf32, #tpu.memory_space<vmem>>, vector<64x128xf32>
    %11 = arith.subf %8, %10 : vector<64x128xf32>
    %12 = math.absf %11 : vector<64x128xf32>
    %13 = arith.addf %9, %12 : vector<64x128xf32>
    %c0_10 = arith.constant 0 : index
    %c0_11 = arith.constant 0 : index
    %14 = vector.load %arg9[%c0_10, %c0_11] : memref<64x128xf32, #tpu.memory_space<vmem>>, vector<64x128xf32>
    tpu.vector_store %arg9[%c0_10, %c0_11], %13 {strides = array<i32>} : memref<64x128xf32, #tpu.memory_space<vmem>>, vector<64x128xf32>,
    %c0_12 = arith.constant 0 : index
    %c0_13 = arith.constant 0 : index
    %15 = vector.load %arg2[%c0_12, %c0_13] : memref<64x128xf32, #tpu.memory_space<vmem>>, vector<64x128xf32>
    %c0_14 = arith.constant 0 : index
    %c0_15 = arith.constant 0 : index
    %16 = vector.load %arg4[%c0_14, %c0_15] : memref<64x128xf32, #tpu.memory_space<vmem>>, vector<64x128xf32>
    %17 = arith.subf %15, %16 : vector<64x128xf32>
    %c0_16 = arith.constant 0 : index
    %c0_17 = arith.constant 0 : index
    %18 = vector.load %arg10[%c0_16, %c0_17] : memref<64x128xf32, #tpu.memory_space<vmem>>, vector<64x128xf32>
    %19 = arith.mulf %17, %17 : vector<64x128xf32>
    %20 = arith.addf %18, %19 : vector<64x128xf32>
    %c0_18 = arith.constant 0 : index
    %c0_19 = arith.constant 0 : index
    %21 = vector.load %arg10[%c0_18, %c0_19] : memref<64x128xf32, #tpu.memory_space<vmem>>, vector<64x128xf32>
    tpu.vector_store %arg10[%c0_18, %c0_19], %20 {strides = array<i32>} : memref<64x128xf32, #tpu.memory_space<vmem>>, vector<64x128xf32>,
    %c0_20 = arith.constant 0 : index
    %c0_21 = arith.constant 0 : index
    %22 = vector.load %arg3[%c0_20, %c0_21] : memref<64x128xf32, #tpu.memory_space<vmem>>, vector<64x128xf32>
    %c0_22 = arith.constant 0 : index
    %c0_23 = arith.constant 0 : index
    %23 = vector.load %arg5[%c0_22, %c0_23] : memref<64x128xf32, #tpu.memory_space<vmem>>, vector<64x128xf32>
    %24 = arith.subf %22, %23 : vector<64x128xf32>
    %c0_24 = arith.constant 0 : index
    %c0_25 = arith.constant 0 : index
    %25 = vector.load %arg11[%c0_24, %c0_25] : memref<64x128xf32, #tpu.memory_space<vmem>>, vector<64x128xf32>
    %26 = arith.mulf %24, %24 : vector<64x128xf32>
    %27 = arith.addf %25, %26 : vector<64x128xf32>
    %c0_26 = arith.constant 0 : index
    %c0_27 = arith.constant 0 : index
    %28 = vector.load %arg11[%c0_26, %c0_27] : memref<64x128xf32, #tpu.memory_space<vmem>>, vector<64x128xf32>
    tpu.vector_store %arg11[%c0_26, %c0_27], %27 {strides = array<i32>} : memref<64x128xf32, #tpu.memory_space<vmem>>, vector<64x128xf32>,
    %c3_i32 = arith.constant 3 : i32
    %29 = arith.cmpi eq, %arg0, %c3_i32 : i32
    %30 = arith.extui %29 : i1 to i32
    %c0_i32_28 = arith.constant 0 : i32
    %31 = arith.cmpi ne, %30, %c0_i32_28 : i32
    scf.if %31 {
      %c0_29 = arith.constant 0 : index
      %c0_30 = arith.constant 0 : index
      %32 = memref.load %arg1[%c0_29, %c0_30] : memref<1x1xf32, #tpu.memory_space<smem>>
      %c0_31 = arith.constant 0 : index
      %c0_32 = arith.constant 0 : index
      %33 = vector.load %arg9[%c0_31, %c0_32] : memref<64x128xf32, #tpu.memory_space<vmem>>, vector<64x128xf32>
      %34 = vector.shape_cast %33 : vector<64x128xf32> to vector<1x64x128xf32>
      %cst_33 = arith.constant dense<0.000000e+00> : vector<1xf32>
      %35 = vector.multi_reduction <add>, %34, %cst_33 [1, 2] : vector<1x64x128xf32> to vector<1xf32>
      %36 = vector.shape_cast %35 : vector<1xf32> to vector<1x1x1xf32>
      %37 = vector.extract %36[0, 0, 0] : f32 from vector<1x1x1xf32>
      %cst_34 = arith.constant 3.05175781E-5 : f32
      %38 = arith.mulf %37, %cst_34 : f32
      %c0_35 = arith.constant 0 : index
      %c0_36 = arith.constant 0 : index
      %39 = vector.load %arg10[%c0_35, %c0_36] : memref<64x128xf32, #tpu.memory_space<vmem>>, vector<64x128xf32>
      %40 = vector.shape_cast %39 : vector<64x128xf32> to vector<1x64x128xf32>
      %cst_37 = arith.constant dense<0.000000e+00> : vector<1xf32>
      %41 = vector.multi_reduction <add>, %40, %cst_37 [1, 2] : vector<1x64x128xf32> to vector<1xf32>
      %42 = vector.shape_cast %41 : vector<1xf32> to vector<1x1x1xf32>
      %43 = vector.extract %42[0, 0, 0] : f32 from vector<1x1x1xf32>
      %44 = math.sqrt %43 : f32
      %c0_38 = arith.constant 0 : index
      %c0_39 = arith.constant 0 : index
      %45 = vector.load %arg11[%c0_38, %c0_39] : memref<64x128xf32, #tpu.memory_space<vmem>>, vector<64x128xf32>
      %46 = vector.shape_cast %45 : vector<64x128xf32> to vector<1x64x128xf32>
      %cst_40 = arith.constant dense<0.000000e+00> : vector<1xf32>
      %47 = vector.multi_reduction <add>, %46, %cst_40 [1, 2] : vector<1x64x128xf32> to vector<1xf32>
      %48 = vector.shape_cast %47 : vector<1xf32> to vector<1x1x1xf32>
      %49 = vector.extract %48[0, 0, 0] : f32 from vector<1x1x1xf32>
      %50 = math.sqrt %49 : f32
      %cst_41 = arith.constant 0.00999999977 : f32
      %51 = arith.addf %cst_41, %38 : f32
      %52 = arith.mulf %32, %44 : f32
      %53 = arith.subf %51, %52 : f32
      %54 = arith.mulf %32, %50 : f32
      %55 = arith.subf %53, %54 : f32
      %c0_42 = arith.constant 0 : index
      %c0_43 = arith.constant 0 : index
      %56 = memref.load %arg8[%c0_42, %c0_43] : memref<1x1xf32, #tpu.memory_space<smem>>
      memref.store %55, %arg8[%c0_42, %c0_43] : memref<1x1xf32, #tpu.memory_space<smem>>
    } else {
    }
    return
  }
  func.func @transform_0(%arg0: i32) -> (i32, i32) {
    %c0_i32 = arith.constant 0 : i32
    %c0_i32_0 = arith.constant 0 : i32
    %c0_i32_1 = arith.constant 0 : i32
    return %c0_i32, %c0_i32_0 : i32, i32
  }
  func.func @transform_1(%arg0: i32) -> (i32, i32) {
    %c0_i32 = arith.constant 0 : i32
    %c0_i32_0 = arith.constant 0 : i32
    return %arg0, %c0_i32 : i32, i32
  }
  func.func @transform_2(%arg0: i32) -> (i32, i32) {
    %c0_i32 = arith.constant 0 : i32
    %c0_i32_0 = arith.constant 0 : i32
    return %arg0, %c0_i32 : i32, i32
  }
  func.func @transform_3(%arg0: i32) -> (i32, i32) {
    %c0_i32 = arith.constant 0 : i32
    %c0_i32_0 = arith.constant 0 : i32
    return %arg0, %c0_i32 : i32, i32
  }
  func.func @transform_4(%arg0: i32) -> (i32, i32) {
    %c0_i32 = arith.constant 0 : i32
    %c0_i32_0 = arith.constant 0 : i32
    return %arg0, %c0_i32 : i32, i32
  }
  func.func @transform_5(%arg0: i32) -> (i32, i32) {
    %c0_i32 = arith.constant 0 : i32
    %c0_i32_0 = arith.constant 0 : i32
    %c0_i32_1 = arith.constant 0 : i32
    return %c0_i32, %c0_i32_0 : i32, i32
  }
  func.func @transform_6(%arg0: i32) -> (i32, i32) {
    %c0_i32 = arith.constant 0 : i32
    %c0_i32_0 = arith.constant 0 : i32
    %c0_i32_1 = arith.constant 0 : i32
    return %c0_i32, %c0_i32_0 : i32, i32
  }
  func.func @transform_7(%arg0: i32) -> (i32, i32) {
    %c0_i32 = arith.constant 0 : i32
    %c0_i32_0 = arith.constant 0 : i32
    %c0_i32_1 = arith.constant 0 : i32
    return %c0_i32, %c0_i32_0 : i32, i32
  }
}

</mosaic_0001>

<bundles_post_ra>
// kernel: tpu_custom_call.1
= control target key start
LH: loop header
LB: loop body
LE: loop exit
PB: predicated region body
PF: predicated region fallthrough
CT: control target
= control target key end

     0   :  { %s1860_s0 = inlined_call_operand.<no memory space> [shape: f32[1,1], index: 0, kind: input, shape index: {}]   ;;  %s1861_s1 = inlined_call_operand.hbm [shape: f32[256,128], index: 1, kind: input, shape index: {}]   ;;  %s1862_s2 = inlined_call_operand.hbm [shape: f32[256,128], index: 2, kind: input, shape index: {}]   ;;  %s1863_s3 = inlined_call_operand.hbm [shape: f32[256,128], index: 3, kind: input, shape index: {}]   ;;  %s1864_s4 = inlined_call_operand.hbm [shape: f32[256,128], index: 4, kind: input, shape index: {}]   ;;  %s1865_s5 = inlined_call_operand.hbm [shape: f32[128,128], index: 5, kind: input, shape index: {}]   ;;  %s1866_s6 = inlined_call_operand.vmem [shape: f32[1,128], index: 6, kind: input, shape index: {}]   ;;  %s1867_s7 = inlined_call_operand.hbm [shape: f32[1,1], index: 7, kind: output, shape index: {}]  }
   0x1   :  { %1878 = sst [smem:[#allocation23_spill]] %s1861_s1 }
   0x2   :  { %1879 = sst [smem:[#allocation24_spill]] %s1862_s2 }
   0x3   :  { %1880 = sst [smem:[#allocation25_spill]] %s1865_s5 }
   0x4   :  { %12 = sst [smem:[#allocation5]] %s1860_s0 }
   0x5   :  { %13 = vsyncpa [#allocation7], 0 }
   0x6   :  { %15 = vsyncpa [#allocation7 + $0x1], 0 }
   0x7   :  { %16 = vsyncpa [#allocation10], 0 }
   0x8   :  { %18 = vsyncpa [#allocation10 + $0x1], 0 }
   0x9   :  { %19 = vsyncpa [#allocation13], 0 }
   0xa   :  { %21 = vsyncpa [#allocation13 + $0x1], 0 }
   0xb   :  { %22 = vsyncpa [#allocation8], 0  ;;  %s1481_s26 = smov 0   ;;  %s1483_s27 = smov 0  }
   0xc   :  { %s1485_s28 = smov 0   ;;  %s1487_s29 = smov 0  }
   0xd LB: > { %1881 = sst [smem:[#allocation21_spill]] %s1423_s28  ;;  %s1500_s0 = sadd.s32 4294967295, %s1427_s29   ;;  %s1427_s29 = sphi %s1487_s29, %s1907_s29   ;;  %s1423_s28 = sphi %s1485_s28, %s1904_s28   ;;  %s1419_s27 = sphi %s1483_s27, %s1906_s27   ;;  %s1415_s26 = sphi %s1481_s26, %s1905_s26  }
   0xe   : > { %s1503_s30 = sadd.s32 1, %s1427_s29   ;;  %s56_s9 = sadd.s32 1, %s1423_s28 }
   0xf   : > { %s53_s8 = ssub.s32 %s1427_s29, %s1503_s30  ;;  %p63_p1 = scmp.ne.s32.totalorder %s1423_s28, %s1419_s27 }
  0x10   : > { %p54_p0 = scmp.eq.s32.totalorder %s53_s8, 0  ;;  %p64_p2 = scmp.eq.s32.totalorder %s1427_s29, 0 }
  0x11   : > { %p69_p3 = scmp.ne.s32.totalorder %s1419_s27, %s1415_s26  ;;  %p1868_p5 = scmp.eq.s32.totalorder %s1500_s0, 0 }
  0x12   : > { %s1513_s10 = scalar_select %p54_p0, %s1423_s28, %s56_s9  }
  0x13   : > { %p1515_p4 = por %p64_p2, %p63_p1  ;;  %p980_p6 = scmp.ge.s32.totalorder %s1427_s29, 1 }
  0x14   : > { %1882 = sst [smem:[#allocation22_spill]] %s1513_s10  ;;  %p221_p7 = scmp.lt.s32.totalorder %s1427_s29, 5 }
  0x15   : > { %s1883_s11 = scalar_select %p1515_p4, 1, 0 }
  0x16   : > { %p1524_p8 = por %p1868_p5, %p69_p3  ;;  %p1529_p10 = pnand %p980_p6, %p221_p7 }
  0x17   : > { %s1429_s14 = smov [#allocation14]   ;;  %s1871_s17 = sand.u32 1, %s1423_s28  }
  0x18   : > { %s1884_s12 = scalar_select %p1524_p8, 1, 0 }
  0x19   : > { %s1885_s13 = scalar_select %p1529_p10, 1, 0 }
  0x1a   : > { %s236_s15 = sshll.u32 %s1429_s14, 4  ;;  %p1154_p11 = pneg %p1529_p10  ;;  %s237_s15 = int_to_ptr.vmem [resolvable:$true] %s236_s15 }
  0x1b   : > { %s1544_s18 = sshll.u32 %s1427_s29, 10  ;;  %s1548_s19 = sshll.u32 %s1871_s17, 6 }
  0x1c   : > { %p1537_p12 = pnand %p1154_p11, %p1868_p5  ;;  %s1887_s5 = sld [smem:[#allocation25_spill]] }
  0x1e   : > { %p1219_p1 = pneg %p1537_p12 }
  0x22   : > { %s1217_s22 = scalar_lea.hbm %s1887_s5, 2048 }
  0x23   : > { %p1218_p0 = scmp.ne.s32.totalorder %s1887_s5, %s1217_s22  ;;  %p1224_p6 = scmp.lt.u32.totalorder %s1217_s22, %s1887_s5 }
  0x25   : > { %p1220_p2 = pnand %p1219_p1, %p1218_p0 }
  0x27   : > { %p1221_p3 = pneg %p1220_p2 }
  0x29   : > { %p1226_p7 = pnand %p1224_p6, %p1221_p3 }
  0x2b   : > { %1229 = shalt.err (!%p1226_p7)
}
  0x2c   : > { %s1230_s8 = scalar_lea.vmem %s237_s15, 2048  ;;  %p1238_p13 = scmp.lt.s32.totalorder %s237_s15, %s237_s15 }
  0x2d   : > { %p1231_p11 = scmp.ne.s32.totalorder %s237_s15, %s1230_s8  ;;  %p1239_p8 = scmp.lt.s32.totalorder %s1230_s8, %s1230_s8 }
  0x2f   : > { %p1233_p9 = pnand %p1231_p11, %p1219_p1  ;;  %p1240_p10 = por %p1239_p8, %p1238_p13 }
  0x31   : > { %p1234_p5 = pneg %p1233_p9 }
  0x33   : > { %p1241_p4 = pnand %p1240_p10, %p1234_p5 }
  0x35   : > { %1244 = shalt.err (!%p1241_p4)
}
  0x36   : > { %s1873_s9 = smov 128   ;;  %s1875_s14 = smov 8  }
  0x37   : > { %1157 = dma.hbm_to_vmem [thread:$0]  (!%p1537_p12), %s1887_s5, 2048, %s237_s15, [#allocation13], %s1873_s9, %s1873_s9, %s1875_s14  }
  0x38   : > { %p1888_p8 = scmp.ne.s32.totalorder %s1883_s11, 0  ;;  %p1889_p5 = scmp.lt.s32.totalorder %s1427_s29, 4 }
  0x39   : > { %s1872_s23 = sand.u32 1, %s1427_s29   ;;  %s1891_s2 = sld [smem:[#allocation24_spill]] }
  0x3a   : > { %p1573_p4 = pnand %p1889_p5, %p1888_p8  ;;  %s278_s16 = scalar_lea.vmem [#allocation9], %s1548_s19 }
  0x3b   : > { %s285_s8 = sshll.u32 %s278_s16, 4  ;;  %s1589_s11 = scalar_lea.sflag [#allocation10], %s1872_s23  ;;  %s1585_s8 = int_to_ptr.vmem [resolvable:$true] %s285_s8 }
  0x3c   : > { %p1595_p10 = pneg %p1573_p4 }
  0x3f   : > { %s1582_s26 = scalar_lea.hbm %s1891_s2, %s1544_s18  ;;  %s1250_s25 = scalar_lea.hbm %s1891_s2, 4096 }
  0x40   : > { %s1245_s15 = scalar_lea.hbm %s1582_s26, 1024  ;;  %p1251_p0 = scmp.lt.u32.totalorder %s1582_s26, %s1891_s2 }
  0x41   : > { %p1246_p9 = scmp.ne.s32.totalorder %s1582_s26, %s1245_s15  ;;  %p1252_p1 = scmp.lt.u32.totalorder %s1250_s25, %s1245_s15 }
  0x42   : > { %p1254_p3 = scmp.lt.u32.totalorder %s1245_s15, %s1582_s26 }
  0x43   : > { %p1248_p12 = pnand %p1595_p10, %p1246_p9  ;;  %p1253_p2 = por %p1252_p1, %p1251_p0 }
  0x45   : > { %p1249_p13 = pneg %p1248_p12  ;;  %p1255_p6 = por %p1254_p3, %p1253_p2 }
  0x47   : > { %p1256_p7 = pnand %p1255_p6, %p1249_p13 }
  0x49   : > { %1259 = shalt.err (!%p1256_p7)
}
  0x4a   : > { %s1260_s23 = scalar_lea.vmem %s1585_s8, 1024  ;;  %s1432_s21 = smov [#allocation9]  }
  0x4b   : > { %p1261_p11 = scmp.ne.s32.totalorder %s1585_s8, %s1260_s23  ;;  %s1265_s24 = sshll.u32 %s1432_s21, 4  ;;  %s1266_s24 = int_to_ptr.vmem [resolvable:$false] %s1265_s24 }
  0x4c   : > { %s1267_s17 = scalar_lea.vmem %s1266_s24, 2048  ;;  %p1268_p9 = scmp.lt.s32.totalorder %s1585_s8, %s1266_s24 }
  0x4d   : > { %p1263_p8 = pnand %p1261_p11, %p1595_p10  ;;  %p1269_p12 = scmp.lt.s32.totalorder %s1267_s17, %s1260_s23 }
  0x4f   : > { %p1264_p5 = pneg %p1263_p8  ;;  %p1270_p0 = por %p1269_p12, %p1268_p9 }
  0x51   : > { %p1271_p1 = pnand %p1270_p0, %p1264_p5 }
  0x53   : > { %1274 = shalt.err (!%p1271_p1)
}
  0x54   : > { %1164 = dma.hbm_to_vmem [thread:$0]  (!%p1573_p4), %s1582_s26, 1024, %s1585_s8, %s1589_s11, %s1873_s9, %s1873_s9, %s1875_s14  }
  0x55   : > { %s1893_s1 = sld [smem:[#allocation23_spill]]  ;;  %s257_s16 = scalar_lea.vmem [#allocation6], %s1548_s19 }
  0x56   : > { %s264_s21 = sshll.u32 %s257_s16, 4  ;;  %s1635_s2 = scalar_lea.hbm %s1863_s3, %s1544_s18  ;;  %s1629_s21 = int_to_ptr.vmem [resolvable:$true] %s264_s21 }
  0x57   : > { %s1894_s5 = sand.u32 1, %s1423_s28  }
  0x58   : > { %s1639_s26 = scalar_lea.sflag [#allocation7], %s1894_s5 }
  0x5b   : > { %s1626_s23 = scalar_lea.hbm %s1893_s1, %s1544_s18  ;;  %s1280_s9 = scalar_lea.hbm %s1893_s1, 4096 }
  0x5c   : > { %s1275_s8 = scalar_lea.hbm %s1626_s23, 1024  ;;  %p1281_p6 = scmp.lt.u32.totalorder %s1626_s23, %s1893_s1 }
  0x5d   : > { %p1276_p13 = scmp.ne.s32.totalorder %s1626_s23, %s1275_s8  ;;  %p1282_p7 = scmp.lt.u32.totalorder %s1280_s9, %s1275_s8 }
  0x5e   : > { %p1284_p8 = scmp.lt.u32.totalorder %s1275_s8, %s1626_s23 }
  0x5f   : > { %p1278_p2 = pnand %p1276_p13, %p1595_p10  ;;  %p1283_p11 = por %p1282_p7, %p1281_p6 }
  0x61   : > { %p1279_p3 = pneg %p1278_p2  ;;  %p1285_p5 = por %p1284_p8, %p1283_p11 }
  0x63   : > { %p1286_p9 = pnand %p1285_p5, %p1279_p3 }
  0x65   : > { %1289 = shalt.err (!%p1286_p9)
}
  0x66   : > { %s1290_s5 = scalar_lea.vmem %s1629_s21, 1024  ;;  %s1433_s24 = smov [#allocation6]  }
  0x67   : > { %p1291_p12 = scmp.ne.s32.totalorder %s1629_s21, %s1290_s5  ;;  %s1295_s17 = sshll.u32 %s1433_s24, 4  ;;  %s1296_s17 = int_to_ptr.vmem [resolvable:$false] %s1295_s17 }
  0x68   : > { %s1297_s14 = scalar_lea.vmem %s1296_s17, 2048  ;;  %p1298_p13 = scmp.lt.s32.totalorder %s1629_s21, %s1296_s17 }
  0x69   : > { %p1293_p0 = pnand %p1291_p12, %p1595_p10  ;;  %p1299_p2 = scmp.lt.s32.totalorder %s1297_s14, %s1290_s5 }
  0x6b   : > { %p1294_p1 = pneg %p1293_p0  ;;  %p1300_p6 = por %p1299_p2, %p1298_p13 }
  0x6d   : > { %p1301_p7 = pnand %p1300_p6, %p1294_p1 }
  0x6f   : > { %1304 = shalt.err (!%p1301_p7)
}
  0x70   : > { %s1895_s9 = smov 8   ;;  %s1896_s8 = smov 128  }
  0x71   : > { %1161 = dma.hbm_to_vmem [thread:$0]  (!%p1573_p4), %s1626_s23, 1024, %s1629_s21, %s1639_s26, %s1896_s8, %s1896_s8, %s1895_s9  }
  0x72   : > { %s299_s15 = scalar_lea.vmem [#allocation11], %s1548_s19  ;;  %s1673_s24 = scalar_lea.hbm %s1864_s4, %s1544_s18 }
  0x73   : > { %s306_s25 = sshll.u32 %s299_s15, 4  ;;  %s1305_s17 = scalar_lea.hbm %s1635_s2, 1024  ;;  %s1667_s25 = int_to_ptr.vmem [resolvable:$true] %s306_s25 }
  0x74   : > { %p1306_p3 = scmp.ne.s32.totalorder %s1635_s2, %s1305_s17  ;;  %s1310_s10 = scalar_lea.hbm %s1863_s3, 4096 }
  0x75   : > { %p1311_p5 = scmp.lt.u32.totalorder %s1635_s2, %s1863_s3  ;;  %p1312_p9 = scmp.lt.u32.totalorder %s1310_s10, %s1305_s17 }
  0x76   : > { %p1308_p11 = pnand %p1306_p3, %p1595_p10  ;;  %p1314_p0 = scmp.lt.u32.totalorder %s1305_s17, %s1635_s2 }
  0x77   : > { %p1313_p12 = por %p1312_p9, %p1311_p5 }
  0x78   : > { %p1309_p8 = pneg %p1308_p11 }
  0x79   : > { %p1315_p1 = por %p1314_p0, %p1313_p12 }
  0x7b   : > { %p1316_p13 = pnand %p1315_p1, %p1309_p8 }
  0x7d   : > { %1319 = shalt.err (!%p1316_p13)
}
  0x7e   : > { %s1320_s18 = scalar_lea.vmem %s1667_s25, 1024  ;;  %s1434_s1 = smov [#allocation11]  }
  0x7f   : > { %p1321_p2 = scmp.ne.s32.totalorder %s1667_s25, %s1320_s18  ;;  %s1325_s21 = sshll.u32 %s1434_s1, 4  ;;  %s1326_s21 = int_to_ptr.vmem [resolvable:$false] %s1325_s21 }
  0x80   : > { %s1327_s28 = scalar_lea.vmem %s1326_s21, 2048  ;;  %p1328_p3 = scmp.lt.s32.totalorder %s1667_s25, %s1326_s21 }
  0x81   : > { %p1323_p6 = pnand %p1321_p2, %p1595_p10  ;;  %p1329_p11 = scmp.lt.s32.totalorder %s1327_s28, %s1320_s18 }
  0x83   : > { %p1324_p7 = pneg %p1323_p6  ;;  %p1330_p5 = por %p1329_p11, %p1328_p3 }
  0x85   : > { %p1331_p9 = pnand %p1330_p5, %p1324_p7 }
  0x87   : > { %1334 = shalt.err (!%p1331_p9)
}
  0x88   : > { %1167 = dma.hbm_to_vmem [thread:$0]  (!%p1573_p4), %s1635_s2, 1024, %s1667_s25, %s1589_s11, %s1896_s8, %s1896_s8, %s1895_s9  }
  0x89   : > { %s320_s10 = scalar_lea.vmem [#allocation12], %s1548_s19  ;;  %s1897_s15 = sand.u32 1, %s1427_s29  }
  0x8a   : > { %s327_s26 = sshll.u32 %s320_s10, 4  ;;  %s1705_s16 = scalar_lea.sflag [#allocation13], %s1897_s15  ;;  %s1701_s26 = int_to_ptr.vmem [resolvable:$true] %s327_s26 }
  0x8b   : > { %s1335_s5 = scalar_lea.hbm %s1673_s24, 1024  ;;  %s1340_s23 = scalar_lea.hbm %s1864_s4, 4096 }
  0x8c   : > { %p1336_p8 = scmp.ne.s32.totalorder %s1673_s24, %s1335_s5  ;;  %p1341_p1 = scmp.lt.u32.totalorder %s1673_s24, %s1864_s4 }
  0x8d   : > { %p1342_p13 = scmp.lt.u32.totalorder %s1340_s23, %s1335_s5  ;;  %p1344_p6 = scmp.lt.u32.totalorder %s1335_s5, %s1673_s24 }
  0x8e   : > { %p1338_p12 = pnand %p1336_p8, %p1595_p10 }
  0x8f   : > { %p1343_p2 = por %p1342_p13, %p1341_p1 }
  0x90   : > { %p1339_p0 = pneg %p1338_p12 }
  0x91   : > { %p1345_p7 = por %p1344_p6, %p1343_p2 }
  0x93   : > { %p1346_p3 = pnand %p1345_p7, %p1339_p0 }
  0x95   : > { %1349 = shalt.err (!%p1346_p3)
}
  0x96   : > { %s1350_s2 = scalar_lea.vmem %s1701_s26, 1024  ;;  %s1435_s29 = smov [#allocation12]  }
  0x97   : > { %p1351_p11 = scmp.ne.s32.totalorder %s1701_s26, %s1350_s2  ;;  %s1355_s19 = sshll.u32 %s1435_s29, 4  ;;  %s1356_s19 = int_to_ptr.vmem [resolvable:$false] %s1355_s19 }
  0x98   : > { %s1357_s11 = scalar_lea.vmem %s1356_s19, 2048  ;;  %p1358_p8 = scmp.lt.s32.totalorder %s1701_s26, %s1356_s19 }
  0x99   : > { %p1353_p5 = pnand %p1351_p11, %p1595_p10  ;;  %p1359_p12 = scmp.lt.s32.totalorder %s1357_s11, %s1350_s2 }
  0x9b   : > { %p1354_p9 = pneg %p1353_p5  ;;  %p1360_p1 = por %p1359_p12, %p1358_p8 }
  0x9d   : > { %p1361_p13 = pnand %p1360_p1, %p1354_p9 }
  0x9f   : > { %1364 = shalt.err (!%p1361_p13)
}
  0xa0   : > { %1170 = dma.hbm_to_vmem [thread:$0]  (!%p1573_p4), %s1673_s24, 1024, %s1701_s26, %s1705_s16, %s1896_s8, %s1896_s8, %s1895_s9  }
  0xa1   : > { %p1898_p10 = scmp.ne.s32.totalorder %s1885_s13, 0 }
  0xa2   : > { %s341_s20 = sand.u32 (!%p1898_p10), 1, %s1419_s27   ;;  %p1899_p0 = scmp.ne.s32.totalorder (!%p1898_p10), %s1884_s12, 0 }
  0xa3   : > { %339 = sbr.rel (%p1898_p10) target bundleno = 835 (0x343), region = 48  ;;  %s996_s25 = sshll.u32 (!%p1898_p10), %s341_s20, 6 }
  0xa4   : > { %s342_s21 = scalar_lea.sflag (!%p1898_p10), [#allocation7], %s341_s20  ;;  %s1735_s28 = scalar_lea.vmem (!%p1898_p10), [#allocation6], %s996_s25 }
  0xaa   : > { %1394 = dma.done.wait (%p1899_p0), %s342_s21, 1024  }
  0xab   : > { %1396 = vsyncadd (%p1899_p0), %s342_s21, 4294966272  ;;  %s350_s22 = sand.u32 1, %s1500_s0   ;;  %s1742_s9 = scalar_lea.vmem [#allocation9], %s996_s25 }
  0xac   : > { %s351_s10 = scalar_lea.sflag [#allocation10], %s350_s22 }
  0xad   : > { %1398 = dma.done.wait (%p1899_p0), %s351_s10, 2048  }
  0xae   : > { %1400 = vsyncadd (%p1899_p0), %s351_s10, 4294965248  ;;  %s1748_s13 = scalar_lea.vmem [#allocation11], %s996_s25  ;;  %s369_s8 = scalar_lea.sflag [#allocation13], %s350_s22 }
  0xaf   : > { %s1750_s24 = scalar_lea.vmem [#allocation12], %s996_s25 }
  0xb0   : > { %1402 = dma.done.wait (%p1899_p0), %s369_s8, 1024  }
  0xb1   : > { %1404 = vsyncadd (%p1899_p0), %s369_s8, 4294966272  ;;  %p1900_p4 = scmp.eq.s32.totalorder %s1500_s0, 0 }
  0xb3   : > { %1406 = dma.done.wait (%p1900_p4), [#allocation13], 2048   ;;  %p1901_p2 = pmov %p1900_p4 }
  0xb4   : > { %p1902_p6 = scmp.ne.s32.totalorder %s1500_s0, 0 }
  0xb5   : > { %1408 = vsyncadd (%p1901_p2), [#allocation13], 4294965248  ;;  %v1436_v0 = vmov (!%p1902_p6), 0.0  }
  0xb6   : > { %424 = sbr.rel (%p1902_p6) target bundleno = 194 (0xc2), region = 72  ;;  %425 = vst [vmem:[#allocation2] sm:$0xff] (!%p1902_p6), %v1436_v0  ;;  %426 = vst [vmem:[#allocation2 + $0x8] sm:$0xff] (!%p1902_p6), %v1436_v0 }
  0xb7   : > { %427 = vst [vmem:[#allocation2 + $0x10] sm:$0xff] (!%p1902_p6), %v1436_v0  ;;  %428 = vst [vmem:[#allocation2 + $0x18] sm:$0xff] (!%p1902_p6), %v1436_v0 }
  0xb8   : > { %429 = vst [vmem:[#allocation2 + $0x20] sm:$0xff] (!%p1902_p6), %v1436_v0  ;;  %430 = vst [vmem:[#allocation2 + $0x28] sm:$0xff] (!%p1902_p6), %v1436_v0 }
  0xb9   : > { %431 = vst [vmem:[#allocation2 + $0x30] sm:$0xff] (!%p1902_p6), %v1436_v0  ;;  %432 = vst [vmem:[#allocation2 + $0x38] sm:$0xff] (!%p1902_p6), %v1436_v0 }
  0xba   : > { %433 = vst [vmem:[#allocation3] sm:$0xff] (!%p1902_p6), %v1436_v0  ;;  %434 = vst [vmem:[#allocation3 + $0x8] sm:$0xff] (!%p1902_p6), %v1436_v0 }
  0xbb   : > { %435 = vst [vmem:[#allocation3 + $0x10] sm:$0xff] (!%p1902_p6), %v1436_v0  ;;  %436 = vst [vmem:[#allocation3 + $0x18] sm:$0xff] (!%p1902_p6), %v1436_v0 }
  0xbc   : > { %437 = vst [vmem:[#allocation3 + $0x20] sm:$0xff] (!%p1902_p6), %v1436_v0  ;;  %438 = vst [vmem:[#allocation3 + $0x28] sm:$0xff] (!%p1902_p6), %v1436_v0 }
  0xbd   : > { %439 = vst [vmem:[#allocation3 + $0x30] sm:$0xff] %v1436_v0  ;;  %440 = vst [vmem:[#allocation3 + $0x38] sm:$0xff] %v1436_v0 }
  0xbe   : > { %441 = vst [vmem:[#allocation4] sm:$0xff] %v1436_v0  ;;  %442 = vst [vmem:[#allocation4 + $0x8] sm:$0xff] %v1436_v0 }
  0xbf   : > { %443 = vst [vmem:[#allocation4 + $0x10] sm:$0xff] %v1436_v0  ;;  %444 = vst [vmem:[#allocation4 + $0x18] sm:$0xff] %v1436_v0 }
  0xc0   : > { %445 = vst [vmem:[#allocation4 + $0x20] sm:$0xff] %v1436_v0  ;;  %446 = vst [vmem:[#allocation4 + $0x28] sm:$0xff] %v1436_v0 }
  0xc1   : > { %447 = vst [vmem:[#allocation4 + $0x30] sm:$0xff] %v1436_v0  ;;  %448 = vst [vmem:[#allocation4 + $0x38] sm:$0xff] %v1436_v0 }
  0xc2 PF: > { %v457_v1 = vld [vmem:[#allocation14] sm:$0xff]  ;;  %v458_v2 = vld [vmem:[#allocation14 + $0x8] sm:$0xff]  ;;  %v459_v3 = vld [vmem:[#allocation14 + $0x10] sm:$0xff]  ;;  %p1003_p7 = scmp.ne.s32.totalorder %s1500_s0, 3 }
  0xc3   : > { %v1080_v4 = vpack.c.bf16 %v458_v2, %v457_v1  ;;  %v460_v5 = vld [vmem:[#allocation14 + $0x18] sm:$0xff]  ;;  %v461_v7 = vld [vmem:[#allocation14 + $0x20] sm:$0xff]  ;;  %v462_v8 = vld [vmem:[#allocation14 + $0x28] sm:$0xff]  ;;  %s749_s5 = sld [smem:[#allocation5]] (!%p1003_p7) }
  0xc4   : > { %v1084_v6 = vpack.c.bf16 %v460_v5, %v459_v3  ;;  %v1088_v9 = vpack.c.bf16 %v462_v8, %v461_v7  ;;  %v449_v10 = vld [vmem:[%s1748_s13] sm:$0xff]  ;;  %v463_v12 = vld [vmem:[#allocation14 + $0x30] sm:$0xff]  ;;  %v464_v13 = vld [vmem:[#allocation14 + $0x38] sm:$0xff] }
  0xc5   : > { %1081 = vmatprep.subr.bf16.mxu0 %v1080_v4  ;;  %1112 = vmatprep.subr.bf16.mxu1 %v1080_v4  ;;  %v1764_v11 = vld [vmem:[%s1748_s13 + $0x20] sm:$0xff]  ;;  %v1092_v14 = vpack.c.bf16 %v464_v13, %v463_v12  ;;  %v466_v16 = vld [vmem:[#allocation14 + $0x48] sm:$0xff]  ;;  %v467_v18 = vld [vmem:[#allocation14 + $0x50] sm:$0xff] }
  0xc6   : > { %1083 = vmatpush3.bf16.msra.mxu0 %v1080_v4  ;;  %1120 = vmatpush3.bf16.msra.mxu1 %v1080_v4  ;;  %v465_v15 = vld [vmem:[#allocation14 + $0x40] sm:$0xff]  ;;  %v468_v19 = vld [vmem:[#allocation14 + $0x58] sm:$0xff]  ;;  %v470_v22 = vld [vmem:[#allocation14 + $0x68] sm:$0xff] }
  0xc7   : > { %1085 = vmatprep.subr.bf16.mxu0 %v1084_v6  ;;  %1113 = vmatprep.subr.bf16.mxu1 %v1084_v6  ;;  %v1096_v17 = vpack.c.bf16 %v466_v16, %v465_v15  ;;  %v1100_v20 = vpack.c.bf16 %v468_v19, %v467_v18  ;;  %v469_v21 = vld [vmem:[#allocation14 + $0x60] sm:$0xff]  ;;  %v471_v24 = vld [vmem:[#allocation14 + $0x70] sm:$0xff]  ;;  %v472_v25 = vld [vmem:[#allocation14 + $0x78] sm:$0xff] }
  0xc8   : > { %1068 = vmatprep.mubr.f32.mxu0 %v449_v10  ;;  %1074 = vmatprep.mubr.f32.mxu1 %v1764_v11  ;;  %v1104_v23 = vpack.c.bf16 %v470_v22, %v469_v21  ;;  %v1108_v26 = vpack.c.bf16 %v472_v25, %v471_v24  ;;  %v450_v27 = vld [vmem:[%s1748_s13 + $0x8] sm:$0xff]  ;;  %v451_v29 = vld [vmem:[%s1748_s13 + $0x10] sm:$0xff]  ;;  %v452_v31 = vld [vmem:[%s1748_s13 + $0x18] sm:$0xff] }
  0xc9   : > { %v454_v28 = vld [vmem:[%s1748_s13 + $0x28] sm:$0xff]  ;;  %v455_v30 = vld [vmem:[%s1748_s13 + $0x30] sm:$0xff]  ;;  %v456_v32 = vld [vmem:[%s1748_s13 + $0x38] sm:$0xff] }
  0xca   : > { %1087 = vmatpush3.bf16.msra.mxu0 %v1084_v6  ;;  %1121 = vmatpush3.bf16.msra.mxu1 %v1084_v6  ;;  %v633_v33 = vld [vmem:[%s1735_s28] sm:$0xff]  ;;  %v634_v34 = vld [vmem:[%s1735_s28 + $0x8] sm:$0xff]  ;;  %v635_v35 = vld [vmem:[%s1735_s28 + $0x10] sm:$0xff] }
  0xcb   : > { %1089 = vmatprep.subr.bf16.mxu0 %v1088_v9  ;;  %1114 = vmatprep.subr.bf16.mxu1 %v1088_v9  ;;  %v636_v36 = vld [vmem:[%s1735_s28 + $0x18] sm:$0xff]  ;;  %v637_v37 = vld [vmem:[%s1735_s28 + $0x20] sm:$0xff]  ;;  %v649_v38 = vsub.f32 %v633_v33, %v449_v10  ;;  %v650_v39 = vsub.f32 %v634_v34, %v450_v27  ;;  %v638_v40 = vld [vmem:[%s1735_s28 + $0x28] sm:$0xff]  ;;  %v651_v41 = vsub.f32 %v635_v35, %v451_v29 }
  0xcc   : > { %v652_v42 = vsub.f32 %v636_v36, %v452_v31  ;;  %v653_v43 = vsub.f32 %v637_v37, %v1764_v11  ;;  %v1781_v44 = vld [vmem:[%s1750_s24 + $0x10] sm:$0xff]  ;;  %v654_v46 = vsub.f32 %v638_v40, %v454_v28  ;;  %v1785_v49 = vld [vmem:[%s1750_s24 + $0x18] sm:$0xff]  ;;  %v657_v52 = vld [vmem:[#allocation3] sm:$0xff] }
  0xcd   : > { %v639_v45 = vld [vmem:[%s1735_s28 + $0x30] sm:$0xff]  ;;  %v665_v47 = vmul.f32 %v649_v38, %v649_v38  ;;  %v666_v48 = vmul.f32 %v650_v39, %v650_v39  ;;  %v640_v50 = vld [vmem:[%s1735_s28 + $0x38] sm:$0xff]  ;;  %v658_v53 = vld [vmem:[#allocation3 + $0x8] sm:$0xff]  ;;  %v667_v54 = vmul.f32 %v651_v41, %v651_v41 }
  0xce   : > { %1091 = vmatpush3.bf16.msra.mxu0 %v1088_v9  ;;  %1122 = vmatpush3.bf16.msra.mxu1 %v1088_v9  ;;  %v655_v51 = vsub.f32 %v639_v45, %v455_v30  ;;  %v668_v55 = vmul.f32 %v652_v42, %v652_v42  ;;  %v669_v56 = vmul.f32 %v653_v43, %v653_v43  ;;  %v1789_v57 = vld [vmem:[%s1750_s24 + $0x8] sm:$0xff]  ;;  %v1792_v58 = vld [vmem:[%s1750_s24] sm:$0xff]  ;;  %v1795_v59 = vld [vmem:[%s1750_s24 + $0x38] sm:$0xff] }
  0xcf   : > { %1093 = vmatprep.subr.bf16.mxu0 %v1092_v14  ;;  %1115 = vmatprep.subr.bf16.mxu1 %v1092_v14  ;;  %v1798_v60 = vld [vmem:[%s1750_s24 + $0x30] sm:$0xff]  ;;  %v656_v61 = vsub.f32 %v640_v50, %v456_v32  ;;  %v660_v63 = vld [vmem:[#allocation3 + $0x18] sm:$0xff]  ;;  %v661_v0 = vld [vmem:[#allocation3 + $0x20] sm:$0xff]  ;;  %v670_v1 = vmul.f32 %v654_v46, %v654_v46  ;;  %v673_v2 = vadd.f32 %v665_v47, %v657_v52 }
  0xd0   : > { %v659_v62 = vld [vmem:[#allocation3 + $0x10] sm:$0xff]  ;;  %v674_v3 = vadd.f32 %v666_v48, %v658_v53  ;;  %v1801_v4 = vld [vmem:[%s1750_s24 + $0x28] sm:$0xff]  ;;  %v1804_v5 = vld [vmem:[%s1750_s24 + $0x20] sm:$0xff]  ;;  %v671_v9 = vmul.f32 %v655_v51, %v655_v51  ;;  %v676_v11 = vadd.f32 %v668_v55, %v660_v63  ;;  %v677_v12 = vadd.f32 %v669_v56, %v661_v0 }
  0xd1   : > { %v662_v6 = vld [vmem:[#allocation3 + $0x28] sm:$0xff]  ;;  %v663_v7 = vld [vmem:[#allocation3 + $0x30] sm:$0xff]  ;;  %v664_v8 = vld [vmem:[#allocation3 + $0x38] sm:$0xff]  ;;  %v675_v10 = vadd.f32 %v667_v54, %v659_v62  ;;  %v672_v13 = vmul.f32 %v656_v61, %v656_v61  ;;  %681 = vst [vmem:[#allocation3] sm:$0xff] %v673_v2 }
  0xd2   : > { %1095 = vmatpush3.bf16.msra.mxu0 %v1092_v14  ;;  %1123 = vmatpush3.bf16.msra.mxu1 %v1092_v14  ;;  %v678_v14 = vadd.f32 %v670_v1, %v662_v6  ;;  %682 = vst [vmem:[#allocation3 + $0x8] sm:$0xff] %v674_v3  ;;  %v689_v15 = vld [vmem:[%s1742_s9] sm:$0xff]  ;;  %v690_v16 = vld [vmem:[%s1742_s9 + $0x8] sm:$0xff]  ;;  %v679_v18 = vadd.f32 %v671_v9, %v663_v7  ;;  %684 = vst [vmem:[#allocation3 + $0x18] sm:$0xff] %v676_v11 }
  0xd3   : > { %1097 = vmatprep.subr.bf16.mxu0 %v1096_v17  ;;  %1116 = vmatprep.subr.bf16.mxu1 %v1096_v17  ;;  %683 = vst [vmem:[#allocation3 + $0x10] sm:$0xff] %v675_v10  ;;  %685 = vst [vmem:[#allocation3 + $0x20] sm:$0xff] %v677_v12  ;;  %v692_v19 = vld [vmem:[%s1742_s9 + $0x18] sm:$0xff]  ;;  %v694_v21 = vld [vmem:[%s1742_s9 + $0x28] sm:$0xff]  ;;  %v705_v22 = vsub.f32 %v689_v15, %v1792_v58  ;;  %v680_v25 = vadd.f32 %v672_v13, %v664_v8 }
  0xd4   : > { %686 = vst [vmem:[#allocation3 + $0x28] sm:$0xff] %v678_v14  ;;  %687 = vst [vmem:[#allocation3 + $0x30] sm:$0xff] %v679_v18  ;;  %v714_v34 = vld [vmem:[#allocation4 + $0x8] sm:$0xff]  ;;  %v715_v35 = vld [vmem:[#allocation4 + $0x10] sm:$0xff] }
  0xd5   : > { %v716_v36 = vld [vmem:[#allocation4 + $0x18] sm:$0xff]  ;;  %v721_v37 = vmul.f32 %v705_v22, %v705_v22  ;;  %688 = vst [vmem:[#allocation3 + $0x38] sm:$0xff] %v680_v25  ;;  %v717_v39 = vld [vmem:[#allocation4 + $0x20] sm:$0xff]  ;;  %v718_v40 = vld [vmem:[#allocation4 + $0x28] sm:$0xff] }
  0xd6   : > { %1099 = vmatpush3.bf16.msra.mxu0 %v1096_v17  ;;  %1124 = vmatpush3.bf16.msra.mxu1 %v1096_v17  ;;  %v691_v17 = vld [vmem:[%s1742_s9 + $0x10] sm:$0xff]  ;;  %v720_v47 = vld [vmem:[#allocation4 + $0x38] sm:$0xff]  ;;  %v1002_v63 = vld [vmem:[%s1866_s6] ss:$0 sm:$0xff] }
  0xd7   : > { %1101 = vmatprep.subr.bf16.mxu0 %v1100_v20  ;;  %1117 = vmatprep.subr.bf16.mxu1 %v1100_v20  ;;  %v707_v24 = vsub.f32 %v691_v17, %v1781_v44  ;;  %v719_v41 = vld [vmem:[#allocation4 + $0x30] sm:$0xff]  ;;  %v586_v10 = vld [vmem:[#allocation2 + $0x8] sm:$0xff]  ;;  %v585_v14 = vld [vmem:[#allocation2] sm:$0xff] }
  0xd8   : > { %v590_v13 = vld [vmem:[#allocation2 + $0x28] sm:$0xff] }
  0xd9   : > { %v723_v42 = vmul.f32 %v707_v24, %v707_v24 }
  0xda   : > { %1103 = vmatpush3.bf16.msra.mxu0 %v1100_v20  ;;  %1125 = vmatpush3.bf16.msra.mxu1 %v1100_v20  ;;  %v693_v20 = vld [vmem:[%s1742_s9 + $0x20] sm:$0xff] }
  0xdb   : > { %1105 = vmatprep.subr.bf16.mxu0 %v1104_v23  ;;  %1118 = vmatprep.subr.bf16.mxu1 %v1104_v23  ;;  %v731_v53 = vadd.f32 %v723_v42, %v715_v35 }
  0xdd   : > { %739 = vst [vmem:[#allocation4 + $0x10] sm:$0xff] %v731_v53 }
  0xde   : > { %1107 = vmatpush3.bf16.msra.mxu0 %v1104_v23  ;;  %1126 = vmatpush3.bf16.msra.mxu1 %v1104_v23  ;;  %v706_v23 = vsub.f32 %v690_v16, %v1789_v57  ;;  %v589_v16 = vld [vmem:[#allocation2 + $0x20] sm:$0xff] }
  0xdf   : > { %1109 = vmatprep.subr.bf16.mxu0 %v1108_v26  ;;  %1119 = vmatprep.subr.bf16.mxu1 %v1108_v26 }
  0xe0   : > { %v722_v38 = vmul.f32 %v706_v23, %v706_v23 }
  0xe2   : > { %1111 = vmatpush3.bf16.msra.mxu0 %v1108_v26  ;;  %1127 = vmatpush3.bf16.msra.mxu1 %v1108_v26  ;;  %v695_v26 = vld [vmem:[%s1742_s9 + $0x30] sm:$0xff]  ;;  %v730_v52 = vadd.f32 %v722_v38, %v714_v34 }
  0xe3   : > { %v587_v38 = vld [vmem:[#allocation2 + $0x10] sm:$0xff] }
  0xe4   : > { %738 = vst [vmem:[#allocation4 + $0x8] sm:$0xff] %v730_v52  ;;  %v777_v52 = vld [vmem:[#allocation3 + $0x10] sm:$0xff] (!%p1003_p7) }
  0xe5   : > { %1069 = vmatmul.mubr.f32.vlgmr.msra.gmra.mrb[0].mxu0 %v450_v27  ;;  %1075 = vmatmul.mubr.f32.vlgmr.msra.gmra.mrb[0].mxu1 %v454_v28  ;;  %v696_v27 = vld [vmem:[%s1742_s9 + $0x38] sm:$0xff]  ;;  %v708_v28 = vsub.f32 %v692_v19, %v1785_v49 }
  0xe6   : > { %1071 = vmatprep.mubr.f32.mxu0 %v451_v29  ;;  %1077 = vmatprep.mubr.f32.mxu1 %v455_v30  ;;  %v709_v29 = vsub.f32 %v693_v20, %v1804_v5  ;;  %v710_v30 = vsub.f32 %v694_v21, %v1801_v4  ;;  %v712_v33 = vsub.f32 %v696_v27, %v1795_v59 }
  0xe7   : > { %v724_v43 = vmul.f32 %v708_v28, %v708_v28 }
  0xe8   : > { %v725_v45 = vmul.f32 %v709_v29, %v709_v29  ;;  %v726_v46 = vmul.f32 %v710_v30, %v710_v30  ;;  %v728_v50 = vmul.f32 %v712_v33, %v712_v33  ;;  %v592_v33 = vld [vmem:[#allocation2 + $0x38] sm:$0xff] }
  0xe9   : > { %1072 = vmatmul.mubr.f32.gmra.mrb[2].mxu0 %v452_v31  ;;  %1078 = vmatmul.mubr.f32.gmra.mrb[2].mxu1 %v456_v32  ;;  %v713_v31 = vld [vmem:[#allocation4] sm:$0xff]  ;;  %v711_v32 = vsub.f32 %v695_v26, %v1798_v60  ;;  %v732_v54 = vadd.f32 %v724_v43, %v716_v36 }
  0xea   : > { %v729_v51 = vadd.f32 %v721_v37, %v713_v31  ;;  %v733_v55 = vadd.f32 %v725_v45, %v717_v39  ;;  %v734_v56 = vadd.f32 %v726_v46, %v718_v40  ;;  %v736_v62 = vadd.f32 %v728_v50, %v720_v47  ;;  %v591_v39 = vld [vmem:[#allocation2 + $0x30] sm:$0xff] }
  0xeb   : > { %v727_v48 = vmul.f32 %v711_v32, %v711_v32  ;;  %740 = vst [vmem:[#allocation4 + $0x18] sm:$0xff] %v732_v54  ;;  %v588_v32 = vld [vmem:[#allocation2 + $0x18] sm:$0xff] }
  0xec   : > { %737 = vst [vmem:[#allocation4] sm:$0xff] %v729_v51  ;;  %741 = vst [vmem:[#allocation4 + $0x20] sm:$0xff] %v733_v55  ;;  %v776_v51 = vld [vmem:[#allocation3 + $0x8] sm:$0xff] (!%p1003_p7) }
  0xed   : > { %v735_v61 = vadd.f32 %v727_v48, %v719_v41  ;;  %742 = vst [vmem:[#allocation4 + $0x28] sm:$0xff] %v734_v56  ;;  %744 = vst [vmem:[#allocation4 + $0x38] sm:$0xff] %v736_v62  ;;  %v775_v48 = vld [vmem:[#allocation3] sm:$0xff] (!%p1003_p7)  ;;  %v778_v56 = vld [vmem:[#allocation3 + $0x18] sm:$0xff] (!%p1003_p7) }
  0xee   : > { %v783_v54 = vadd.f32 (!%p1003_p7), %v776_v51, %v775_v48  ;;  %v809_v62 = vld [vmem:[#allocation4 + $0x8] sm:$0xff] (!%p1003_p7) }
  0xef   : > { %743 = vst [vmem:[#allocation4 + $0x30] sm:$0xff] %v735_v61 }
  0xf3   : > { %v808_v61 = vld [vmem:[#allocation4] sm:$0xff] (!%p1003_p7) }
 0x1b8   : > { %v1070_v0 = vpop.f32.mrb[0].mxu0  ;;  %v1076_v1 = vpop.f32.mrb[0].mxu1 }
 0x1b9   : > { %v552_v2 = vadd.f32 %v1070_v0, %v1002_v63  ;;  %v572_v3 = vadd.f32 %v1076_v1, %v1002_v63  ;;  %v546_v6 = vpop.f32.mrb[1].mxu0  ;;  %v566_v7 = vpop.f32.mrb[1].mxu1  ;;  %v784_v0 = vadd.f32 (!%p1003_p7), %v783_v54, %v777_v52  ;;  %v810_v1 = vld [vmem:[#allocation4 + $0x10] sm:$0xff] (!%p1003_p7) }
 0x1ba   : > { %v547_v8 = vadd.f32 %v1002_v63, %v546_v6  ;;  %v567_v9 = vadd.f32 %v1002_v63, %v566_v7  ;;  %v779_v6 = vld [vmem:[#allocation3 + $0x20] sm:$0xff] (!%p1003_p7)  ;;  %v811_v7 = vld [vmem:[#allocation4 + $0x18] sm:$0xff] (!%p1003_p7) }
 0x1bb   : > { %v602_v11 = vsub.f32 %v552_v2, %v1789_v57  ;;  %v606_v12 = vsub.f32 %v572_v3, %v1801_v4  ;;  %v816_v2 = vadd.f32 (!%p1003_p7), %v809_v62, %v808_v61 }
 0x1bc   : > { %v601_v15 = vsub.f32 %v547_v8, %v1792_v58  ;;  %v605_v17 = vsub.f32 %v567_v9, %v1804_v5  ;;  %v1073_v18 = vpop.f32.mrb[2].mxu0  ;;  %v1079_v19 = vpop.f32.mrb[2].mxu1  ;;  %v785_v9 = vadd.f32 (!%p1003_p7), %v784_v0, %v778_v56 }
 0x1bd   : > { %v610_v20 = vand.u32 2147483647, %v602_v11  ;;  %v614_v21 = vand.u32 2147483647, %v606_v12  ;;  %v562_v22 = vadd.f32 %v1073_v18, %v1002_v63  ;;  %v582_v23 = vadd.f32 %v1079_v19, %v1002_v63  ;;  %v556_v24 = vpop.f32.mrb[3].mxu0  ;;  %v576_v25 = vpop.f32.mrb[3].mxu1 }
 0x1be   : > { %v609_v26 = vand.u32 2147483647, %v601_v15  ;;  %v613_v27 = vand.u32 2147483647, %v605_v17  ;;  %v557_v57 = vadd.f32 %v1002_v63, %v556_v24  ;;  %v577_v28 = vadd.f32 %v1002_v63, %v576_v25  ;;  %v780_v12 = vld [vmem:[#allocation3 + $0x28] sm:$0xff] (!%p1003_p7)  ;;  %v781_v18 = vld [vmem:[#allocation3 + $0x30] sm:$0xff] (!%p1003_p7) }
 0x1bf   : > { %v618_v4 = vadd.f32 %v610_v20, %v586_v10  ;;  %v622_v29 = vadd.f32 %v614_v21, %v590_v13  ;;  %v604_v30 = vsub.f32 %v562_v22, %v1785_v49  ;;  %v608_v58 = vsub.f32 %v582_v23, %v1795_v59  ;;  %v812_v13 = vld [vmem:[#allocation4 + $0x20] sm:$0xff] (!%p1003_p7)  ;;  %v813_v19 = vld [vmem:[#allocation4 + $0x28] sm:$0xff] (!%p1003_p7)  ;;  %v782_v23 = vld [vmem:[#allocation3 + $0x38] sm:$0xff] (!%p1003_p7) }
 0x1c0   : > { %v617_v31 = vadd.f32 %v609_v26, %v585_v14  ;;  %v621_v5 = vadd.f32 %v613_v27, %v589_v16  ;;  %v603_v34 = vsub.f32 %v557_v57, %v1781_v44  ;;  %v607_v35 = vsub.f32 %v577_v28, %v1798_v60  ;;  %748 = sbr.rel (%p1003_p7) target bundleno = 820 (0x334), region = 76  ;;  %v814_v24 = vld [vmem:[#allocation4 + $0x30] sm:$0xff] (!%p1003_p7)  ;;  %v815_v27 = vld [vmem:[#allocation4 + $0x38] sm:$0xff] (!%p1003_p7) }
 0x1c1   : > { %626 = vst [vmem:[#allocation2 + $0x8] sm:$0xff] %v618_v4  ;;  %630 = vst [vmem:[#allocation2 + $0x28] sm:$0xff] %v622_v29  ;;  %v612_v36 = vand.u32 2147483647, %v604_v30  ;;  %v616_v37 = vand.u32 2147483647, %v608_v58  ;;  %v817_v10 = vadd.f32 (!%p1003_p7), %v816_v2, %v810_v1  ;;  %v786_v15 = vadd.f32 (!%p1003_p7), %v785_v9, %v779_v6 }
 0x1c2   : > { %625 = vst [vmem:[#allocation2] sm:$0xff] %v617_v31  ;;  %629 = vst [vmem:[#allocation2 + $0x20] sm:$0xff] %v621_v5  ;;  %v611_v40 = vand.u32 2147483647, %v603_v34  ;;  %v615_v49 = vand.u32 2147483647, %v607_v35 }
 0x1c3   : > { %v620_v41 = vadd.f32 %v612_v36, %v588_v32  ;;  %v624_v59 = vadd.f32 %v616_v37, %v592_v33  ;;  %v818_v16 = vadd.f32 (!%p1003_p7), %v817_v10, %v811_v7  ;;  %v787_v20 = vadd.f32 (!%p1003_p7), %v786_v15, %v780_v12 }
 0x1c4   : > { %v619_v42 = vadd.f32 %v611_v40, %v587_v38  ;;  %v623_v43 = vadd.f32 %v615_v49, %v591_v39 }
 0x1c5   : > { %628 = vst [vmem:[#allocation2 + $0x18] sm:$0xff] %v620_v41  ;;  %632 = vst [vmem:[#allocation2 + $0x38] sm:$0xff] %v624_v59  ;;  %v819_v21 = vadd.f32 (!%p1003_p7), %v818_v16, %v812_v13  ;;  %v788_v25 = vadd.f32 (!%p1003_p7), %v787_v20, %v781_v18 }
 0x1c6   : > { %627 = vst [vmem:[#allocation2 + $0x10] sm:$0xff] %v619_v42  ;;  %631 = vst [vmem:[#allocation2 + $0x30] sm:$0xff] %v623_v43 }
 0x1c7   : > { %v820_v26 = vadd.f32 %v819_v21, %v813_v19  ;;  %v789_v57 = vadd.f32 %v788_v25, %v782_v23 }
 0x1c8   : > { %v751_v60 = vld [vmem:[#allocation2 + $0x8] sm:$0xff] }
 0x1c9   : > { %v750_v44 = vld [vmem:[#allocation2] sm:$0xff]  ;;  %v755_v63 = vld [vmem:[#allocation2 + $0x28] sm:$0xff]  ;;  %v821_v28 = vadd.f32 %v820_v26, %v814_v24 }
 0x1ca   : > { %v758_v46 = vadd.f32 %v751_v60, %v750_v44  ;;  %v754_v53 = vld [vmem:[#allocation2 + $0x20] sm:$0xff] }
 0x1cb   : > { %v822_v4 = vadd.f32 %v821_v28, %v815_v27 }
 0x1cc   : > { %v753_v47 = vld [vmem:[#allocation2 + $0x18] sm:$0xff] }
 0x1cd   : > { %v752_v45 = vld [vmem:[#allocation2 + $0x10] sm:$0xff]  ;;  %v757_v14 = vld [vmem:[#allocation2 + $0x38] sm:$0xff]  ;;  %823 = vadd.xlane.f32.xlu1 %v822_v4 }
 0x1ce   : > { %v759_v50 = vadd.f32 %v758_v46, %v752_v45  ;;  %v756_v8 = vld [vmem:[#allocation2 + $0x30] sm:$0xff] }
 0x1d0   : > { %v760_v55 = vadd.f32 %v759_v50, %v753_v47 }
 0x1d2   : > { %v761_v3 = vadd.f32 %v760_v55, %v754_v53 }
 0x1d4   : > { %v762_v11 = vadd.f32 %v761_v3, %v755_v63 }
 0x1d6   : > { %v763_v17 = vadd.f32 %v762_v11, %v756_v8 }
 0x1d8   : > { %v764_v22 = vadd.f32 %v763_v17, %v757_v14 }
 0x1da   : > { %765 = vadd.xlane.f32.xlu0 %v764_v22 }
 0x1de   : > { %790 = vadd.xlane.f32.xlu0 %v789_v57 }
 0x25a   : > { %v824_v49 = vpop.xlane.xlu1 %823 }
 0x25b   : > { %v825_v41 = vrot.slane %v824_v49, 4 }
 0x25d   : > { %v826_v59 = vadd.f32 %v825_v41, %v824_v49 }
 0x25f   : > { %v827_v43 = vrot.slane %v826_v59, 2 }
 0x261   : > { %v828_v44 = vadd.f32 %v827_v43, %v826_v59 }
 0x263   : > { %v829_v45 = vrot.slane %v828_v44, 1 }
 0x265   : > { %v830_v51 = vadd.f32 %v829_v45, %v828_v44 }
 0x267   : > { %v766_v29 = vpop.xlane.xlu0 %765 }
 0x268   : > { %v767_v30 = vrot.slane %v766_v29, 4 }
 0x26a   : > { %v768_v58 = vadd.f32 %v767_v30, %v766_v29 }
 0x26b   : > { %v791_v31 = vpop.xlane.xlu0 %790 }
 0x26c   : > { %v769_v5 = vrot.slane %v768_v58, 2  ;;  %v792_v32 = vrot.slane %v791_v31, 4 }
 0x26e   : > { %v793_v33 = vadd.f32 %v792_v32, %v791_v31  ;;  %v770_v34 = vadd.f32 %v769_v5, %v768_v58 }
 0x270   : > { %v794_v35 = vrot.slane %v793_v33, 2  ;;  %v771_v36 = vrot.slane %v770_v34, 1 }
 0x272   : > { %v795_v37 = vadd.f32 %v794_v35, %v793_v33  ;;  %v772_v38 = vadd.f32 %v771_v36, %v770_v34 }
 0x274   : > { %1128 = vpush %v772_v38  ;;  %v796_v39 = vrot.slane %v795_v37, 1 }
 0x276   : > { %v797_v40 = vadd.f32 %v796_v39, %v795_v37 }
 0x278   : > { %1130 = vpush %v797_v40 }
 0x2a5   : > { %s1129_s15 = spop %1128 }
 0x2a6   : > { %s774_s17 = smul.f32 3.0517578e-05, %s1129_s15 }
 0x2a8   : > { %s841_s14 = sadd.f32 0.01, %s774_s17 }
 0x2a9   : > { %s1131_s16 = spop %1130 }
 0x2aa   : > { %v799_v42 = vstv %s1131_s16 }
 0x2ab   : > { %1213 = vrsqrt.f32 %v799_v42  ;;  %vm802_vm0 = vcmp.eq.f32.partialorder %v799_v42, inf  ;;  %v805_v47 = vand.u32 2147483648, %v799_v42  ;;  %vm804_vm1 = vcmp.eq.f32.partialorder %v799_v42, 0.0 }
 0x2b5   : > { %v1214_v60 = vpop.eup %1213 }
 0x2b6   : > { %v801_v46 = vmul.f32 %v1214_v60, %v799_v42 }
 0x2b8   : > { %v803_v48 = vsel %vm802_vm0, %v799_v42, %v801_v46 }
 0x2b9   : > { %v806_v50 = vsel %vm804_vm1, %v805_v47, %v803_v48 }
 0x2ba   : > { %1132 = vpush %v806_v50 }
 0x2bb   : > { %1134 = vpush %v830_v51 }
 0x2eb   : > { %s1133_s23 = spop %1132 }
 0x2ec   : > { %s842_s18 = smul.f32 %s1133_s23, %s749_s5  ;;  %s1135_s1 = spop %1134 }
 0x2ed   : > { %v832_v52 = vstv %s1135_s1 }
 0x2ee   : > { %s843_s2 = ssub.f32 %s841_s14, %s842_s18  ;;  %1215 = vrsqrt.f32 %v832_v52  ;;  %vm835_vm2 = vcmp.eq.f32.partialorder %v832_v52, inf  ;;  %v838_v55 = vand.u32 2147483648, %v832_v52  ;;  %vm837_vm3 = vcmp.eq.f32.partialorder %v832_v52, 0.0 }
 0x2f8   : > { %v1216_v53 = vpop.eup %1215 }
 0x2f9   : > { %v834_v54 = vmul.f32 %v1216_v53, %v832_v52 }
 0x2fb   : > { %v836_v56 = vsel %vm835_vm2, %v832_v52, %v834_v54 }
 0x2fc   : > { %v839_v61 = vsel %vm837_vm3, %v838_v55, %v836_v56 }
 0x2fd   : > { %1136 = vpush %v839_v61 }
 0x32e   : > { %s1137_s29 = spop %1136 }
 0x32f   : > { %s844_s19 = smul.f32 %s1137_s29, %s749_s5 }
 0x331   : > { %s845_s11 = ssub.f32 %s843_s2, %s844_s19 }
 0x333   : > { %847 = sst [smem:[#allocation15]] %s845_s11 }
 0x334 PF: > { %p1174_p3 = scmp.eq.s32.totalorder %s1500_s0, 3  ;;  %s1365_s21 = scalar_lea.hbm %s1867_s7, 16 }
 0x335   : > { %p1366_p11 = scmp.ne.s32.totalorder %s1867_s7, %s1365_s21  ;;  %p1371_p8 = scmp.lt.u32.totalorder %s1365_s21, %s1867_s7 }
 0x337   : > { %p1367_p5 = pnand %p1366_p11, %p1174_p3 }
 0x339   : > { %p1368_p9 = pneg %p1367_p5 }
 0x33b   : > { %p1373_p12 = pnand %p1371_p8, %p1368_p9 }
 0x33d   : > { %1376 = shalt.err (!%p1373_p12)
}
 0x33e   : > { %s1437_s13 = smov [#allocation15]  }
 0x33f   : > { %1151 = dma.smem_to_hbm (%p1174_p3), %s1437_s13, 16, %s1867_s7, [#allocation8]  }
 0x340   : > { %1410 = dma.done.wait (%p1174_p3), [#allocation8], 16  }
 0x341   : > { %1412 = vsyncadd (%p1174_p3), [#allocation8], 4294967280 }
 0x342   : > { %861 = sfence }
 0x343 PF: > { %s1903_s0 = sld [smem:[#allocation21_spill]]  ;;  %s1904_s28 = sld [smem:[#allocation22_spill]] }
 0x344   : > { %p25_p1 = scmp.ge.s32.totalorder %s1503_s30, 6   ;;  %s1905_s26 = smov %s1419_s27 }
 0x345   : > { %s1907_s29 = smov %s1503_s30 }
 0x346   :  { %27 = sbr.rel (!%p25_p1) target bundleno = 13 (0xd), region = 135 }
 0x349   : > { %s1906_s27 = smov %s1903_s0 }
 0x34d   :  { %867 = vsyncpa [#allocation7], 1 }
 0x34e   :  { %869 = vsyncpa [#allocation7 + $0x1], 1 }
 0x34f   :  { %870 = vsyncpa [#allocation10], 1 }
 0x350   :  { %872 = vsyncpa [#allocation10 + $0x1], 1 }
 0x351   :  { %873 = vsyncpa [#allocation13], 1 }
 0x352   :  { %875 = vsyncpa [#allocation13 + $0x1], 1 }
 0x353   :  { %876 = vsyncpa [#allocation8], 1 }
 0x354   :  { %878 = vsyncpa [#allocation8 + $0x1], 1 }

</bundles_post_ra>
